<compile_context>
chip_gen: v7x
topology: tpu7x:2x2x1
jax: 0.10.0
libtpu: 0.0.40
codegen_flags: <defaults>
</compile_context>

<pallas_src>
import functools

import jax
import jax.numpy as jnp
from jax.experimental import pallas as pl
from jax.experimental.pallas import tpu as pltpu


def _mlp_and_store(avg, mx, w1t, w2t, o_ref):
    """sigmoid(fc2(relu(fc1(avg))) + fc2(relu(fc1(max)))) -> o_ref (TN, 1, C).

    fc2 is linear and applied after the ReLU, so a single fc2 matmul on the sum
    of the two hidden activations is exactly equivalent to the PyTorch module.
    """
    h_avg = jnp.maximum(jnp.dot(avg, w1t, preferred_element_type=jnp.float32), 0.0)
    h_max = jnp.maximum(jnp.dot(mx, w1t, preferred_element_type=jnp.float32), 0.0)
    out = jnp.dot(h_avg + h_max, w2t, preferred_element_type=jnp.float32)
    o_ref[...] = jax.nn.sigmoid(out)[:, None, :].astype(o_ref.dtype)


def channel_attention_single_kernel(x_ref, w1t_ref, w2t_ref, o_ref, *, hw_total):
    # Whole spatial extent in one tile: one pass, no scratch, no masks.
    x = x_ref[...].astype(jnp.float32)                       # (TN, C, HW)
    avg = jnp.sum(x, axis=-1) * jnp.float32(1.0 / hw_total)  # true-H*W divisor
    mx = jnp.max(x, axis=-1)
    _mlp_and_store(avg, mx, w1t_ref[...], w2t_ref[...], o_ref)


def channel_attention_tiled_kernel(x_ref, w1t_ref, w2t_ref, o_ref,
                                   sum_acc, max_acc, *,
                                   hw_total, hw_tile, k_blocks):
    # x_ref   : (TN, C, hw_tile)   spatial tile (hw_tile is a multiple of 128)
    # sum_acc : (TN, C, 128) f32   lane-dense running spatial sum
    # max_acc : (TN, C, 128) f32   lane-dense running spatial max
    k = pl.program_id(1)

    @pl.when(k == 0)
    def _():
        sum_acc[...] = jnp.zeros_like(sum_acc)
        max_acc[...] = jnp.full_like(max_acc, -jnp.inf)

    x = x_ref[...].astype(jnp.float32)                       # (TN, C, hw_tile)
    n_lane_blocks = hw_tile // 128
    # Valid lanes in the LAST spatial tile (static trace-time int, 1..hw_tile).
    tail = hw_total - (k_blocks - 1) * hw_tile

    def accumulate(n_valid):
        # n_valid is a static Python int: mask only the single partial slice.
        s = sum_acc[...]
        m = max_acc[...]
        for j in range(n_lane_blocks):
            lo = j * 128
            if lo >= n_valid:
                break                                        # fully padded: skip
            sl = x[..., lo:lo + 128]
            nv = n_valid - lo
            if nv >= 128:                                    # fully valid: no mask
                s = s + sl
                m = jnp.maximum(m, sl)
            else:                                            # the one partial slice
                lane = jax.lax.broadcasted_iota(jnp.int32, sl.shape, 2)
                valid = lane < nv
                s = s + jnp.where(valid, sl, 0.0)
                m = jnp.maximum(m, jnp.where(valid, sl, -jnp.inf))
        sum_acc[...] = s
        max_acc[...] = m

    if tail == hw_tile:
        # H*W divides evenly: every tile is full, never build a mask.
        accumulate(hw_tile)
    else:
        @pl.when(k != k_blocks - 1)
        def _():
            accumulate(hw_tile)

        @pl.when(k == k_blocks - 1)
        def _():
            accumulate(tail)

    @pl.when(k == k_blocks - 1)
    def _():
        # Single cross-lane (XLU) reduce per batch block. Every lane position of
        # max_acc received >=1 un-masked contribution (k_blocks >= 2 here and all
        # tiles before the last are full), so no -inf survives.
        avg = jnp.sum(sum_acc[...], axis=-1) * jnp.float32(1.0 / hw_total)
        mx = jnp.max(max_acc[...], axis=-1)
        _mlp_and_store(avg, mx, w1t_ref[...], w2t_ref[...], o_ref)


def _vmem_budget():
    """Generation-aware VMEM sizing: ~75% of physical, never above 96 MiB."""
    try:
        cap = pltpu.get_tpu_info().vmem_capacity_bytes
    except Exception:
        cap = 64 * 1024 * 1024                     # conservative (v7x-sized) fallback
    vmem_limit = min(cap * 3 // 4, 96 * 1024 * 1024)   # <=48 MiB v7x, <=96 MiB v5e/v6e
    per_buffer = max(1 * 1024 * 1024, min(16 * 1024 * 1024, vmem_limit // 6))
    return int(vmem_limit), int(per_buffer)


def _choose_tiles(N, C, HW, itemsize, max_hw_tile=None):
    vmem_limit, per_buffer = _vmem_budget()

    # Batch tile: <=8 samples; ensure >=2 batch blocks when N >= 2 so the
    # "parallel" axis shards across both v7x TensorCores.
    TN = min(8, N)
    if N >= 2:
        TN = min(TN, pl.cdiv(N, 2))

    def x_bytes(tn, lanes):
        return tn * C * lanes * itemsize

    # Prefer the full spatial extent in one tile (largest contiguous DMAs,
    # k_blocks == 1, no accumulator loop, no mask); shrink TN before splitting HW.
    while TN > 1 and x_bytes(TN, HW) > per_buffer:
        TN = max(1, TN // 2)

    if x_bytes(TN, HW) <= per_buffer and max_hw_tile is None:
        hw_tile = HW
    else:
        # Spatial split: 128-lane-aligned tiles.  Shrink TN first so the 128-lane
        # floor can never overshoot the per-buffer budget.
        while TN > 1 and x_bytes(TN, 128) > per_buffer:
            TN = max(1, TN // 2)
        max_lanes = max(128, (per_buffer // (TN * C * itemsize)) // 128 * 128)
        hw_tile = min(pl.cdiv(HW, 128) * 128, max_lanes)
        if max_hw_tile is not None:
            hw_tile = min(hw_tile, max_hw_tile)
        if hw_tile >= HW:
            hw_tile = HW                           # degenerate back to a single block
    return TN, int(hw_tile), vmem_limit


def channel_attention(x, w1, w2, *, max_hw_tile=None):
    """x: (N, C, H, W); w1: (Ch, C) fc1 1x1-conv weight; w2: (C, Ch) fc2 weight.
    Returns sigmoid channel-attention weights of shape (N, C, 1, 1).
    `max_hw_tile` is a test/tuning knob (multiple of 128) forcing spatial tiling."""
    N, C, H, W = x.shape
    Ch = w1.shape[0]
    HW = H * W
    x_flat = x.reshape(N, C, HW)

    # Pre-transpose once in the wrapper so the kernel never does an XLU .T
    w1_t = jnp.transpose(w1)                       # (C, Ch)
    w2_t = jnp.transpose(w2)                       # (Ch, C)

    TN, hw_tile, vmem_limit = _choose_tiles(N, C, HW, x.dtype.itemsize, max_hw_tile)
    n_blocks = pl.cdiv(N, TN)
    k_blocks = pl.cdiv(HW, hw_tile)

    # Advisory cost model: long, mem-bound op -> XLA can overlap neighbours.
    cost = pl.CostEstimate(
        flops=2 * N * C * HW + 6 * N * C * Ch,
        transcendentals=N * C,
        bytes_accessed=(N * C * HW * x.dtype.itemsize
                        + 2 * C * Ch * w1.dtype.itemsize
                        + N * C * x.dtype.itemsize),
    )
    out_shape = jax.ShapeDtypeStruct((N, 1, C), x.dtype)

    if k_blocks == 1:
        out = pl.pallas_call(
            functools.partial(channel_attention_single_kernel, hw_total=HW),
            out_shape=out_shape,
            grid_spec=pltpu.PrefetchScalarGridSpec(
                num_scalar_prefetch=0,
                grid=(n_blocks,),
                in_specs=[
                    pl.BlockSpec((TN, C, HW), lambda n: (n, 0, 0)),
                    pl.BlockSpec((C, Ch), lambda n: (0, 0)),
                    pl.BlockSpec((Ch, C), lambda n: (0, 0)),
                ],
                out_specs=pl.BlockSpec((TN, 1, C), lambda n: (n, 0, 0)),
            ),
            compiler_params=pltpu.CompilerParams(
                dimension_semantics=("parallel",),
                vmem_limit_bytes=vmem_limit,
            ),
            cost_estimate=cost,
        )(x_flat, w1_t, w2_t)
    else:
        out = pl.pallas_call(
            functools.partial(channel_attention_tiled_kernel,
                              hw_total=HW, hw_tile=hw_tile, k_blocks=k_blocks),
            out_shape=out_shape,
            grid_spec=pltpu.PrefetchScalarGridSpec(
                num_scalar_prefetch=0,
                grid=(n_blocks, k_blocks),         # reduction (spatial) axis last
                in_specs=[
                    pl.BlockSpec((TN, C, hw_tile), lambda n, k: (n, 0, k)),
                    pl.BlockSpec((C, Ch), lambda n, k: (0, 0)),
                    pl.BlockSpec((Ch, C), lambda n, k: (0, 0)),
                ],
                out_specs=pl.BlockSpec((TN, 1, C), lambda n, k: (n, 0, 0)),
                scratch_shapes=[
                    pltpu.VMEM((TN, C, 128), jnp.float32),   # lane-dense running sum
                    pltpu.VMEM((TN, C, 128), jnp.float32),   # lane-dense running max
                ],
            ),
            compiler_params=pltpu.CompilerParams(
                dimension_semantics=("parallel", "arbitrary"),
                vmem_limit_bytes=vmem_limit,
            ),
            cost_estimate=cost,
        )(x_flat, w1_t, w2_t)

    return out.reshape(N, C, 1, 1)


def reference(x, w1, w2):
    # Plain-JAX reference matching the PyTorch module semantics.
    avg = jnp.mean(x, axis=(2, 3))                 # (N, C)
    mx = jnp.max(x, axis=(2, 3))                   # (N, C)

    def branch(v):
        h = jnp.maximum(v @ w1.T, 0.0)             # (N, Ch)
        return h @ w2.T                            # (N, C)

    out = jax.nn.sigmoid(branch(avg) + branch(mx))
    return out.reshape(*out.shape, 1, 1)


if __name__ == "__main__":
    key = jax.random.PRNGKey(0)
    ratio = 16

    # Case 1: module-consistent small shape (in_channels=32, ratio=16 -> hidden=2).
    # H*W fits one tile -> single-block kernel, >=2 batch blocks (megacore split).
    N, C, H, W = 2, 32, 16, 16
    Ch = max(1, C // ratio)
    kx, k1, k2, key = jax.random.split(key, 4)
    x = jax.random.normal(kx, (N, C, H, W), dtype=jnp.float32)
    w1 = jax.random.normal(k1, (Ch, C), dtype=jnp.float32) * 0.1
    w2 = jax.random.normal(k2, (C, Ch), dtype=jnp.float32) * 0.1
    out = jax.block_until_ready(channel_attention(x, w1, w2))
    ref = reference(x, w1, w2)
    assert out.shape == (N, C, 1, 1)
    assert jnp.allclose(out, ref, rtol=1e-5, atol=1e-5)

    # Case 2: force spatial tiling (hw_tile=128) with a non-multiple-of-128 H*W
    # and N % TN != 0 -> exercises the tiled kernel, last-tile mask and batch edge.
    N2, C2, H2, W2 = 3, 32, 20, 20                 # HW = 400 = 3*128 + 16
    kx, k1, k2, key = jax.random.split(key, 4)
    x2 = jax.random.normal(kx, (N2, C2, H2, W2), dtype=jnp.float32)
    w1b = jax.random.normal(k1, (Ch, C2), dtype=jnp.float32) * 0.1
    w2b = jax.random.normal(k2, (C2, Ch), dtype=jnp.float32) * 0.1
    out2 = jax.block_until_ready(channel_attention(x2, w1b, w2b, max_hw_tile=128))
    ref2 = reference(x2, w1b, w2b)
    assert out2.shape == (N2, C2, 1, 1)
    assert jnp.allclose(out2, ref2, rtol=1e-5, atol=1e-5)

    print("KERNEL_OK")
</pallas_src>

<mosaic_0001>
module attributes {stable_mosaic.version = 11 : i64} {
  func.func @channel_attention_single_kernel(%arg0: i32, %arg1: memref<1x32x256xf32, #tpu.memory_space<vmem>>, %arg2: memref<32x2xf32, #tpu.memory_space<vmem>>, %arg3: memref<2x32xf32, #tpu.memory_space<vmem>>, %arg4: memref<1x1x32xf32, #tpu.memory_space<vmem>>) attributes {dimension_semantics = [#tpu.dimension_semantics<parallel>], iteration_bounds = array<i64: 2>, scalar_prefetch = 0 : i64, scratch_operands = 0 : i64, tpu.core_type = #tpu.core_type<tc>, window_params = [{transform_indices = @transform_0, window_bounds = array<i64: 1, 32, 256>}, {pipeline_mode = #tpu.pipeline_mode<synchronous>, transform_indices = @transform_1, window_bounds = array<i64: 32, 2>}, {pipeline_mode = #tpu.pipeline_mode<synchronous>, transform_indices = @transform_2, window_bounds = array<i64: 2, 32>}, {transform_indices = @transform_3, window_bounds = array<i64: 1, 1, 32>}]} {
    %c0 = arith.constant 0 : index
    %c0_0 = arith.constant 0 : index
    %c0_1 = arith.constant 0 : index
    %0 = vector.load %arg1[%c0, %c0_0, %c0_1] : memref<1x32x256xf32, #tpu.memory_space<vmem>>, vector<1x32x256xf32>
    %cst = arith.constant dense<0.000000e+00> : vector<1x32xf32>
    %1 = vector.multi_reduction <add>, %0, %cst [2] : vector<1x32x256xf32> to vector<1x32xf32>
    %cst_2 = arith.constant 3.906250e-03 : f32
    %2 = vector.broadcast %cst_2 : f32 to vector<1x32xf32>
    %3 = arith.mulf %1, %2 : vector<1x32xf32>
    %cst_3 = arith.constant dense<0xFF800000> : vector<1x32xf32>
    %4 = vector.multi_reduction <maximumf>, %0, %cst_3 [2] : vector<1x32x256xf32> to vector<1x32xf32>
    %c0_4 = arith.constant 0 : index
    %c0_5 = arith.constant 0 : index
    %5 = vector.load %arg2[%c0_4, %c0_5] : memref<32x2xf32, #tpu.memory_space<vmem>>, vector<32x2xf32>
    %c0_6 = arith.constant 0 : index
    %c0_7 = arith.constant 0 : index
    %6 = vector.load %arg3[%c0_6, %c0_7] : memref<2x32xf32, #tpu.memory_space<vmem>>, vector<2x32xf32>
    %cst_8 = arith.constant dense<0.000000e+00> : vector<1x2xf32>
    %7 = tpu.matmul %3, %5, %cst_8 {dimension_numbers = #tpu.dot_dimension_numbers<[1], [0], [0], [1], [0, 0, 1, 1], [], []>} : vector<1x32xf32>, vector<32x2xf32>, vector<1x2xf32> -> vector<1x2xf32>
    %cst_9 = arith.constant 0.000000e+00 : f32
    %8 = vector.broadcast %cst_9 : f32 to vector<1x2xf32>
    %9 = arith.maximumf %7, %8 : vector<1x2xf32>
    %cst_10 = arith.constant dense<0.000000e+00> : vector<1x2xf32>
    %10 = tpu.matmul %4, %5, %cst_10 {dimension_numbers = #tpu.dot_dimension_numbers<[1], [0], [0], [1], [0, 0, 1, 1], [], []>} : vector<1x32xf32>, vector<32x2xf32>, vector<1x2xf32> -> vector<1x2xf32>
    %cst_11 = arith.constant 0.000000e+00 : f32
    %11 = vector.broadcast %cst_11 : f32 to vector<1x2xf32>
    %12 = arith.maximumf %10, %11 : vector<1x2xf32>
    %13 = arith.addf %9, %12 : vector<1x2xf32>
    %cst_12 = arith.constant dense<0.000000e+00> : vector<1x32xf32>
    %14 = tpu.matmul %13, %6, %cst_12 {dimension_numbers = #tpu.dot_dimension_numbers<[1], [0], [0], [1], [0, 0, 1, 1], [], []>} : vector<1x2xf32>, vector<2x32xf32>, vector<1x32xf32> -> vector<1x32xf32>
    %15 = arith.negf %14 : vector<1x32xf32>
    %16 = math.exp %15 : vector<1x32xf32>
    %cst_13 = arith.constant 1.000000e+00 : f32
    %17 = vector.broadcast %cst_13 : f32 to vector<1x32xf32>
    %18 = arith.addf %17, %16 : vector<1x32xf32>
    %19 = arith.divf %17, %18 : vector<1x32xf32>
    %20 = vector.shape_cast %19 : vector<1x32xf32> to vector<1x1x32xf32>
    %c0_14 = arith.constant 0 : index
    %c0_15 = arith.constant 0 : index
    %c0_16 = arith.constant 0 : index
    %21 = vector.load %arg4[%c0_14, %c0_15, %c0_16] : memref<1x1x32xf32, #tpu.memory_space<vmem>>, vector<1x1x32xf32>
    tpu.vector_store %arg4[%c0_14, %c0_15, %c0_16], %20 {strides = array<i32>} : memref<1x1x32xf32, #tpu.memory_space<vmem>>, vector<1x1x32xf32>,
    return
  }
  func.func @transform_0(%arg0: i32) -> (i32, i32, i32) {
    %c0_i32 = arith.constant 0 : i32
    %c0_i32_0 = arith.constant 0 : i32
    %c0_i32_1 = arith.constant 0 : i32
    return %arg0, %c0_i32, %c0_i32_0 : i32, i32, i32
  }
  func.func @transform_1(%arg0: i32) -> (i32, i32) {
    %c0_i32 = arith.constant 0 : i32
    %c0_i32_0 = arith.constant 0 : i32
    %c0_i32_1 = arith.constant 0 : i32
    return %c0_i32, %c0_i32_0 : i32, i32
  }
  func.func @transform_2(%arg0: i32) -> (i32, i32) {
    %c0_i32 = arith.constant 0 : i32
    %c0_i32_0 = arith.constant 0 : i32
    %c0_i32_1 = arith.constant 0 : i32
    return %c0_i32, %c0_i32_0 : i32, i32
  }
  func.func @transform_3(%arg0: i32) -> (i32, i32, i32) {
    %c0_i32 = arith.constant 0 : i32
    %c0_i32_0 = arith.constant 0 : i32
    %c0_i32_1 = arith.constant 0 : i32
    return %arg0, %c0_i32, %c0_i32_0 : i32, i32, i32
  }
}

</mosaic_0001>

<bundles_post_ra>
// kernel: tpu_custom_call.1
= control target key start
LH: loop header
LB: loop body
LE: loop exit
PB: predicated region body
PF: predicated region fallthrough
CT: control target
= control target key end

     0   :  { %8 = vsyncpa [#allocation3], 0  ;;  %s1027_s0 = inlined_call_operand.hbm [shape: f32[2,32,256], index: 0, kind: input, shape index: {}]   ;;  %s1028_s1 = inlined_call_operand.vmem [shape: f32[32,2], index: 1, kind: input, shape index: {}]   ;;  %s1029_s2 = inlined_call_operand.vmem [shape: f32[2,32], index: 2, kind: input, shape index: {}]   ;;  %s1030_s3 = inlined_call_operand.hbm [shape: f32[2,1,32], index: 3, kind: output, shape index: {}]  }
   0x1   :  { %10 = vsyncpa [#allocation3 + $0x1], 0 }
   0x2   :  { %11 = vsyncpa [#allocation4], 0 }
   0x3   :  { %13 = vsyncpa [#allocation4 + $0x1], 0  ;;  %s844_s12 = smov 0   ;;  %s846_s13 = smov 0  }
   0x4   :  { %s848_s14 = smov 0   ;;  %s850_s15 = smov 0  }
   0x5 LB: > { %s865_s16 = sadd.s32 4294967295, %s815_s15   ;;  %s596_s17 = sadd.s32 4294967294, %s815_s15   ;;  %s815_s15 = sphi %s850_s15, %s1043_s15   ;;  %s811_s14 = sphi %s848_s14, %s1042_s14   ;;  %s807_s13 = sphi %s846_s13, %s1041_s13   ;;  %s803_s12 = sphi %s844_s12, %s1040_s12  }
   0x6   : > { %s869_s18 = sadd.s32 1, %s815_s15   ;;  %s26_s19 = sadd.s32 1, %s811_s14 }
   0x7   : > { %s23_s20 = ssub.s32 %s815_s15, %s869_s18  ;;  %p33_p0 = scmp.ne.s32.totalorder %s811_s14, %s807_s13 }
   0x8   : > { %p24_p1 = scmp.eq.s32.totalorder %s23_s20, 0  ;;  %p34_p2 = scmp.eq.s32.totalorder %s815_s15, 0 }
   0x9   : > { %p39_p3 = scmp.ne.s32.totalorder %s807_s13, %s803_s12  ;;  %p40_p4 = scmp.eq.s32.totalorder %s865_s16, 0 }
   0xa   : > { %s881_s21 = scalar_select %p24_p1, %s811_s14, %s26_s19  }
   0xb   : > { %p883_p5 = por %p34_p2, %p33_p0  ;;  %p887_p6 = por %p40_p4, %p39_p3 }
   0xc   : > { %p105_p7 = scmp.eq.s32.totalorder %s865_s16, 1  ;;  %p111_p8 = scmp.eq.s32.totalorder %s596_s17, 1 }
   0xd   : > { %p676_p10 = scmp.lt.s32.totalorder %s815_s15, 2  ;;  %s137_s26 = sand.u32 1, %s811_s14  }
   0xe   : > { %p894_p11 = por %p105_p7, %p33_p0  ;;  %p898_p12 = por %p111_p8, %p39_p3 }
   0xf   : > { %s612_s27 = sshll.u32 %s815_s15, 10  ;;  %s599_s28 = sshll.u32 %s137_s26, 6 }
  0x10   : > { %s1034_s24 = scalar_select %p894_p11, 1, 0 }
  0x11   : > { %s1035_s25 = scalar_select %p898_p12, 1, 0 }
  0x12   : > { %s907_s4 = scalar_lea.hbm %s1027_s0, %s612_s27  ;;  %s141_s5 = scalar_lea.vmem [#allocation2], %s599_s28 }
  0x13   : > { %s148_s6 = sshll.u32 %s141_s5, 4  ;;  %p911_p13 = pnand %p676_p10, %p883_p5  ;;  %s915_s6 = int_to_ptr.vmem [resolvable:$true] %s148_s6 }
  0x14   : > { %s917_s8 = scalar_lea.sflag [#allocation3], %s137_s26  ;;  %s719_s9 = scalar_lea.hbm %s907_s4, 1024 }
  0x15   : > { %p720_p0 = scmp.ne.s32.totalorder %s907_s4, %s719_s9  ;;  %p721_p1 = pneg %p911_p13 }
  0x16   : > { %s724_s17 = scalar_lea.hbm %s1027_s0, 2048  ;;  %p725_p4 = scmp.lt.u32.totalorder %s907_s4, %s1027_s0 }
  0x17   : > { %p722_p2 = pnand %p721_p1, %p720_p0  ;;  %p726_p5 = scmp.lt.u32.totalorder %s724_s17, %s719_s9 }
  0x18   : > { %p728_p8 = scmp.lt.u32.totalorder %s719_s9, %s907_s4 }
  0x19   : > { %p723_p3 = pneg %p722_p2  ;;  %p727_p7 = por %p726_p5, %p725_p4 }
  0x1b   : > { %p729_p10 = por %p728_p8, %p727_p7 }
  0x1d   : > { %p730_p9 = pnand %p729_p10, %p723_p3 }
  0x1f   : > { %733 = shalt.err (!%p730_p9)
}
  0x20   : > { %s734_s22 = scalar_lea.vmem %s915_s6, 1024  ;;  %s817_s26 = smov [#allocation2]  }
  0x21   : > { %p735_p0 = scmp.ne.s32.totalorder %s915_s6, %s734_s22  ;;  %s739_s27 = sshll.u32 %s817_s26, 4  ;;  %s740_s27 = int_to_ptr.vmem [resolvable:$false] %s739_s27 }
  0x22   : > { %s741_s28 = scalar_lea.vmem %s740_s27, 2048  ;;  %p742_p11 = scmp.lt.s32.totalorder %s915_s6, %s740_s27 }
  0x23   : > { %p737_p2 = pnand %p735_p0, %p721_p1  ;;  %p743_p4 = scmp.lt.s32.totalorder %s741_s28, %s734_s22 }
  0x25   : > { %p738_p12 = pneg %p737_p2  ;;  %p744_p5 = por %p743_p4, %p742_p11 }
  0x27   : > { %p745_p7 = pnand %p744_p5, %p738_p12 }
  0x29   : > { %748 = shalt.err (!%p745_p7)
}
  0x2a   : > { %s818_s29 = smov 256   ;;  %s819_s30 = smov 16  }
  0x2b   : > { %671 = dma.hbm_to_vmem [thread:$0]  (!%p911_p13), %s907_s4, 1024, %s915_s6, %s917_s8, %s818_s29, %s818_s29, %s819_s30  }
  0x2c   : > { %p602_p9 = scmp.ge.s32.totalorder %s815_s15, 1  ;;  %p156_p1 = scmp.lt.s32.totalorder %s815_s15, 3 }
  0x2e   : > { %p157_p3 = pnand %p602_p9, %p156_p1 }
  0x2f   : > { %s948_s5 = sand.u32 (!%p157_p3), 1, %s807_s13  }
  0x30   : > { %160 = sbr.rel (%p157_p3) target bundleno = 686 (0x2ae), region = 32  ;;  %s603_s9 = sshll.u32 (!%p157_p3), %s948_s5, 6 }
  0x31   : > { %s163_s10 = scalar_lea.sflag (!%p157_p3), [#allocation3], %s948_s5  ;;  %s166_s11 = scalar_lea.vmem (!%p157_p3), [#allocation2], %s603_s9 }
  0x37   : > { %794 = dma.done.wait (%p887_p6), %s163_s10, 1024  }
  0x38   : > { %796 = vsyncadd (%p887_p6), %s163_s10, 4294966272  ;;  %v192_v0 = vld [vmem:[%s166_s11 + $0x20] sm:$0xff]  ;;  %v193_v1 = vld [vmem:[%s166_s11 + $0x28] sm:$0xff]  ;;  %v820_v19 = vmov 0.0|0.0   ;;  %vm821_vm0 = vmmov 0   ;;  %v822_v23 = vmov 0.0   ;;  %v233_v24 = vlaneseq }
  0x39   : > { %v188_v2 = vld [vmem:[%s166_s11] sm:$0xff]  ;;  %v202_v3 = vadd.f32 %v193_v1, %v192_v0  ;;  %v189_v4 = vld [vmem:[%s166_s11 + $0x8] sm:$0xff]  ;;  %v194_v5 = vld [vmem:[%s166_s11 + $0x30] sm:$0xff]  ;;  %v218_v15 = vmax.f32 %v192_v0, %v193_v1  ;;  %652 = vmatprep.subr.bf16.mxu0 %v820_v19  ;;  %658 = vmatprep.subr.bf16.mxu1 %v820_v19  ;;  %vm244_vm1 = vcmask 130112   ;;  %vm251_vm2 = vcmask 195712   ;;  %s609_s27 = sshll.u32 %s865_s16, 4 }
  0x3a   : > { %v195_v6 = vld [vmem:[%s166_s11 + $0x38] sm:$0xff]  ;;  %v196_v7 = vadd.f32 %v189_v4, %v188_v2  ;;  %v190_v8 = vld [vmem:[%s166_s11 + $0x10] sm:$0xff]  ;;  %v212_v13 = vmax.f32 %v188_v2, %v189_v4  ;;  %v224_v16 = vld [vmem:[%s1028_s1] sm:$0xff]  ;;  %633 = vmatprep.mubr.msk.f32.mxu0 %vm821_vm0, %v822_v23  ;;  %644 = vmatprep.mubr.msk.f32.mxu1 %vm821_vm0, %v822_v23  ;;  %v234_v25 = vand.u32 127, %v233_v24  ;;  %v236_v26 = vshrl.u32 %v233_v24, 7  ;;  %s187_s28 = scalar_lea.vmem [#allocation5], %s948_s5  ;;  %s983_s10 = scalar_lea.hbm %s1030_s3, %s609_s27 }
  0x3b   : > { %v191_v9 = vld [vmem:[%s166_s11 + $0x18] sm:$0xff]  ;;  %203 = vadd.xlane.f32.xlu1 %v202_v3  ;;  %v205_v10 = vadd.f32 %v195_v6, %v194_v5  ;;  %v221_v14 = vmax.f32 %v194_v5, %v195_v6  ;;  %v225_v17 = vld [vmem:[%s1028_s1 + $0x8] sm:$0xff]  ;;  %v226_v20 = vld [vmem:[%s1028_s1 + $0x10] sm:$0xff]  ;;  %vm258_vm3 = vcmask 261312   ;;  %vm260_vm4 = vcmask 261120   ;;  %s530_s29 = sshll.u32 %s187_s28, 4  ;;  %s985_s29 = int_to_ptr.vmem [resolvable:$true] %s530_s29 }
  0x3c   : > { %197 = vadd.xlane.f32.xlu0 %v196_v7  ;;  %v199_v11 = vadd.f32 %v191_v9, %v190_v8  ;;  %v215_v12 = vmax.f32 %v190_v8, %v191_v9  ;;  %v653_v18 = vpack.c.bf16 %v225_v17, %v224_v16  ;;  %v227_v21 = vld [vmem:[%s1028_s1 + $0x18] sm:$0xff]  ;;  %v253_v28 = vadd.s32 4294967272, %v234_v25  ;;  %v228_v60 = vld [vmem:[%s1029_s2] sm:$0x3]  ;;  %s518_s11 = scalar_lea.sflag [#allocation4], %s948_s5  ;;  %s749_s23 = scalar_lea.vmem %s985_s29, 16 }
  0x3d   : > { %v656_v22 = vpack.c.bf16 %v227_v21, %v226_v20  ;;  %v239_v29 = vadd.s32 4294967288, %v234_v25  ;;  %v246_v30 = vadd.s32 4294967280, %v234_v25  ;;  %v237_v32 = vsub.s32 %v234_v25, %v236_v26  ;;  %p750_p6 = scmp.ne.s32.totalorder %s985_s29, %s749_s23  ;;  %p1037_p11 = scmp.ne.s32.totalorder %s1034_s24, 0 }
  0x3e   : > { %654 = vmatpush3.bf16.msra.mxu0 %v653_v18  ;;  %660 = vmatpush3.bf16.msra.mxu1 %v653_v18  ;;  %v256_v34 = vsub.s32 %v253_v28, %v236_v26  ;;  %vm435_vm5 = vcmask 1041408   ;;  %vm431_vm6 = vcmask 15360   ;;  %vm515_vm7 = vcmask 253952   ;;  %s823_s16 = smov [#allocation5]  }
  0x3f   : > { %206 = vadd.xlane.f32.xlu1 %v205_v10  ;;  %655 = vmatprep.subr.bf16.mxu0 %v820_v19  ;;  %v242_v36 = vsub.s32 %v239_v29, %v236_v26  ;;  %v249_v37 = vsub.s32 %v246_v30, %v236_v26  ;;  %p751_p12 = pnand %p750_p6, %p1037_p11  ;;  %s753_s4 = sshll.u32 %s823_s16, 4  ;;  %s754_s4 = int_to_ptr.vmem [resolvable:$false] %s753_s4 }
  0x40   : > { %200 = vadd.xlane.f32.xlu0 %v199_v11  ;;  %661 = vmatprep.subr.bf16.mxu1 %v820_v19  ;;  %s755_s6 = scalar_lea.vmem %s754_s4, 32  ;;  %p756_p8 = scmp.lt.s32.totalorder %s985_s29, %s754_s4 }
  0x41   : > { %p752_p13 = pneg %p751_p12  ;;  %p757_p10 = scmp.lt.s32.totalorder %s755_s6, %s749_s23 }
  0x42   : > { %657 = vmatpush3.bf16.msra.mxu0 %v656_v22  ;;  %663 = vmatpush3.bf16.msra.mxu1 %v656_v22 }
  0x43   : > { %216 = vmax.xlane.f32.xlu1 %v215_v12  ;;  %647 = vmatprep.subr.mxu0 %v822_v23  ;;  %p758_p0 = por %p757_p10, %p756_p8 }
  0x44   : > { %213 = vmax.xlane.f32.xlu0 %v212_v13 }
  0x45   : > { %p759_p2 = pnand %p758_p0, %p752_p13 }
  0x47   : > { %222 = vmax.xlane.f32.xlu1 %v221_v14 }
  0x48   : > { %219 = vmax.xlane.f32.xlu0 %v218_v15 }
  0xc8   : > { %v204_v27 = vpop.xlane.xlu1 %203 }
  0xc9   : > { %v198_v31 = vpop.xlane.xlu0 %197  ;;  %v210_v38 = vmul.f32 0.00390625, %v204_v27 }
  0xca   : > { %v208_v33 = vmul.f32 0.00390625, %v198_v31 }
  0xcb   : > { %v250_v46 = vrot.slane %v210_v38, %v249_v37 }
  0xcc   : > { %v207_v35 = vpop.xlane.xlu1 %206  ;;  %v238_v42 = vrot.slane %v208_v33, %v237_v32 }
  0xcd   : > { %v211_v39 = vmul.f32 0.00390625, %v207_v35  ;;  %v201_v40 = vpop.xlane.xlu0 %200 }
  0xce   : > { %v209_v41 = vmul.f32 0.00390625, %v201_v40 }
  0xcf   : > { %v257_v43 = vrot.slane %v211_v39, %v256_v34 }
  0xd0   : > { %v243_v44 = vrot.slane %v209_v41, %v242_v36  ;;  %v217_v45 = vpop.xlane.xlu1 %216 }
  0xd1   : > { %v214_v47 = vpop.xlane.xlu0 %213  ;;  %v345_v49 = vrot.slane %v217_v45, %v242_v36 }
  0xd2   : > { %v245_v48 = vsel %vm244_vm1, %v243_v44, %v238_v42  ;;  %v341_v50 = vrot.slane %v214_v47, %v237_v32 }
  0xd3   : > { %v252_v51 = vsel %vm251_vm2, %v250_v46, %v245_v48 }
  0xd4   : > { %v259_v52 = vsel %vm258_vm3, %v257_v43, %v252_v51  ;;  %v223_v53 = vpop.xlane.xlu1 %222  ;;  %v346_v57 = vsel %vm244_vm1, %v345_v49, %v341_v50 }
  0xd5   : > { %634 = vmatmul.mubr.msk.f32.vlgmr.msra.gmra.mrb[0].mxu0 %vm260_vm4, %v259_v52  ;;  %v220_v54 = vpop.xlane.xlu0 %219  ;;  %v355_v55 = vrot.slane %v223_v53, %v256_v34 }
  0xd6   : > { %v350_v56 = vrot.slane %v220_v54, %v249_v37  ;;  %649 = vmatprep.mubr.msk.f32.mxu0 %vm821_vm0, %v822_v23  ;;  %648 = vmatpush3.msk.msra.mxu0 %vm435_vm5, %v228_v60 }
  0xd8   : > { %v351_v58 = vsel %vm251_vm2, %v350_v56, %v346_v57 }
  0xd9   : > { %v356_v59 = vsel %vm258_vm3, %v355_v55, %v351_v58 }
  0xda   : > { %645 = vmatmul.mubr.msk.f32.vlgmr.msra.gmra.mrb[0].mxu1 %vm260_vm4, %v356_v59 }
 0x1a8   : > { %v329_v61 = vpop.f32.mrb[0].mxu0 }
 0x1a9   : > { %v635_v62 = vpop.f32.mrb[1].mxu0  ;;  %v333_v0 = vmax.f32 %v329_v61, 0.0 }
 0x1ad   : > { %v425_v63 = vpop.f32.mrb[0].mxu1 }
 0x1ae   : > { %v429_v1 = vmax.f32 %v425_v63, 0.0  ;;  %v646_v2 = vpop.f32.mrb[1].mxu1 }
 0x1b0   : > { %v430_v3 = vadd.f32 %v429_v1, %v333_v0 }
 0x1b2   : > { %650 = vmatmul.mubr.msk.f32.vlgmr.msra.gmra.mrb[2].mxu0 %vm431_vm6, %v430_v3 }
 0x285   : > { %v505_v4 = vpop.f32.mrb[2].mxu0 }
 0x286   : > { %v608_v5 = vmul.f32 -1.442695, %v505_v4  ;;  %v651_v6 = vpop.f32.mrb[3].mxu0 }
 0x288   : > { %715 = vpow2.f32 %v608_v5 }
 0x292   : > { %v716_v7 = vpop.eup %715 }
 0x293   : > { %v512_v8 = vadd.f32 1.0, %v716_v7 }
 0x295   : > { %717 = vrcp.f32 %v512_v8 }
 0x29f   : > { %v718_v9 = vpop.eup %717 }
 0x2a0   : > { %516 = vst.msk [vmem:[%s187_s28] sm:$0x1] %vm515_vm7, %v718_v9 }
 0x2a1   : > { %762 = shalt.err (!%p759_p2)
}
 0x2a2   : > { %s763_s5 = scalar_lea.hbm %s983_s10, 16  ;;  %s767_s17 = scalar_lea.hbm %s1030_s3, 32 }
 0x2a3   : > { %p764_p4 = scmp.ne.s32.totalorder %s983_s10, %s763_s5  ;;  %p768_p9 = scmp.lt.u32.totalorder %s983_s10, %s1030_s3 }
 0x2a4   : > { %p769_p1 = scmp.lt.u32.totalorder %s767_s17, %s763_s5  ;;  %p771_p6 = scmp.lt.u32.totalorder %s763_s5, %s983_s10 }
 0x2a5   : > { %p765_p5 = pnand %p764_p4, %p1037_p11 }
 0x2a6   : > { %p770_p3 = por %p769_p1, %p768_p9 }
 0x2a7   : > { %p766_p7 = pneg %p765_p5 }
 0x2a8   : > { %p772_p12 = por %p771_p6, %p770_p3 }
 0x2aa   : > { %p773_p13 = pnand %p772_p12, %p766_p7 }
 0x2ac   : > { %776 = shalt.err (!%p773_p13)
}
 0x2ad   : > { %666 = dma.vmem_to_hbm [thread:$0]  (%p1037_p11), %s985_s29, 16, %s983_s10, %s518_s11  }
 0x2ae PF: > { %s542_s22 = sand.u32 1, %s803_s12   ;;  %p1038_p8 = scmp.ne.s32.totalorder %s1035_s25, 0 }
 0x2af   : > { %p1039_p10 = scmp.ge.s32.totalorder %s815_s15, 2  ;;  %s543_s26 = scalar_lea.sflag [#allocation4], %s542_s22 }
 0x2b1   : > { %p673_p0 = pnand %p1039_p10, %p1038_p8 }
 0x2b3   : > { %798 = dma.done.wait (!%p673_p0), %s543_s26, 16  }
 0x2b4   : > { %800 = vsyncadd (!%p673_p0), %s543_s26, 4294967280  ;;  %p16_p2 = scmp.ge.s32.totalorder %s869_s18, 4   ;;  %s1040_s12 = smov %s807_s13 }
 0x2b5   : > { %s1041_s13 = smov %s811_s14  ;;  %s1042_s14 = smov %s881_s21 }
 0x2b6   : > { %s1043_s15 = smov %s869_s18  ;;  %18 = sbr.rel (!%p16_p2) target bundleno = 5 (0x5), region = 77 }
 0x2bd   :  { %547 = vsyncpa [#allocation3], 1 }
 0x2be   :  { %549 = vsyncpa [#allocation3 + $0x1], 1 }
 0x2bf   :  { %550 = vsyncpa [#allocation4], 1 }
 0x2c0   :  { %552 = vsyncpa [#allocation4 + $0x1], 1 }

</bundles_post_ra>
